<compile_context>
chip_gen: v5e
topology: v5e:2x2
jax: 0.10.0
libtpu: 0.0.40
codegen_flags: <defaults>
</compile_context>

<pallas_src>
import numpy as np
import jax
import jax.numpy as jnp
from jax import lax
from jax.experimental import pallas as pl


# ----------------------------- Pallas kernels ------------------------------

def _conv_relu_pool_kernel(w_ref, b_ref, p0_ref, p1_ref, p2_ref, p3_ref,
                           o_ref):
    """Fused conv-as-matmul + bias + ReLU + 2x2/2 max-pool.

    w_ref : (Cout, K)   reshaped conv weight
    b_ref : (Cout, 1)   bias (broadcast over lanes)
    pX_ref: (K, R)      im2col patches of pool quadrant X, R = B*POH*POW
    o_ref : (Cout, R)   pooled activations, lane-dense on R
    """
    w = w_ref[...]
    b = b_ref[...]

    def quad(p_ref):
        return jnp.dot(w, p_ref[...], preferred_element_type=jnp.float32) + b

    y = jnp.maximum(jnp.maximum(quad(p0_ref), quad(p1_ref)),
                    jnp.maximum(quad(p2_ref), quad(p3_ref)))
    o_ref[...] = jnp.maximum(y, 0.0).astype(o_ref.dtype)


def _mlp_head_kernel(x_ref, w1_ref, b1_ref, w2_ref, b2_ref, w3_ref, b3_ref,
                     o_ref):
    """Fused fc1 + ReLU -> fc2 -> fc3 -> log_softmax (all weights in VMEM)."""
    h = jnp.dot(x_ref[...], w1_ref[...], preferred_element_type=jnp.float32)
    h = jnp.maximum(h + b1_ref[...], 0.0)
    h = jnp.dot(h, w2_ref[...], preferred_element_type=jnp.float32) + b2_ref[...]
    h = jnp.dot(h, w3_ref[...], preferred_element_type=jnp.float32) + b3_ref[...]
    m = jnp.max(h, axis=-1, keepdims=True)
    s = h - m
    lse = jnp.log(jnp.sum(jnp.exp(s), axis=-1, keepdims=True))
    o_ref[...] = (s - lse).astype(o_ref.dtype)


# ------------------------------ layer wrappers ------------------------------

def conv_relu_pool(x, w, b, padding):
    """PyTorch-semantics Conv2d(stride=1) + ReLU + MaxPool2d(2, 2), fused.

    x: (B, Cin, H, W) NCHW, w: (Cout, Cin, KH, KW), b: (Cout,)
    Returns (B, Cout, OH//2, OW//2) NCHW.
    """
    B, Cin, H, W = x.shape
    Cout, _, KH, KW = w.shape
    OH = H + 2 * padding - KH + 1
    OW = W + 2 * padding - KW + 1
    POH, POW = OH // 2, OW // 2
    K = Cin * KH * KW
    R = B * POH * POW

    # One fused XLA gather for all sliding windows; feature order (c, kh, kw).
    # TODO(synk): moving this gather fully in-kernel (image resident in VMEM,
    # accumulate shifted-window matmuls) would avoid the K-fold HBM patch
    # duplication; kept as a single fused XLA op for lowering robustness.
    patches = lax.conv_general_dilated_patches(
        x, (KH, KW), (1, 1),
        ((padding, padding), (padding, padding)))           # (B, K, OH, OW)

    # Split conv-output positions by 2x2 pool quadrant; present each quadrant
    # as a lane-dense (K, B*POH*POW) slab for the transposed matmul.
    quads = []
    for dh in (0, 1):
        for dw in (0, 1):
            pq = patches[:, :, dh::2, dw::2]                # (B, K, POH, POW)
            quads.append(pq.transpose(1, 0, 2, 3).reshape(K, R))

    out = pl.pallas_call(
        _conv_relu_pool_kernel,
        out_shape=jax.ShapeDtypeStruct((Cout, R), jnp.float32),
    )(w.reshape(Cout, K), b.reshape(Cout, 1), *quads)        # (Cout, R)

    # Back to NCHW for the next stage (tiny, fuses into surrounding glue).
    return out.reshape(Cout, B, POH, POW).transpose(1, 0, 2, 3)


def mlp_head(x, params):
    """x: (B, 400) -> (B, 10) log-probabilities, one fused kernel."""
    w1, b1 = params["fc1"]
    w2, b2 = params["fc2"]
    w3, b3 = params["fc3"]
    B = x.shape[0]
    return pl.pallas_call(
        _mlp_head_kernel,
        out_shape=jax.ShapeDtypeStruct((B, w3.shape[1]), jnp.float32),
    )(x, w1, b1, w2, b2, w3, b3)


# ------------------------------- LeNet model --------------------------------

def init_lenet_params(key):
    """PyTorch-style uniform(-1/sqrt(fan_in), 1/sqrt(fan_in)) init.

    Conv weights kept in PyTorch (Cout, Cin, KH, KW) layout (the reshape to
    (Cout, K) is free); FC weights stored pre-transposed as (K, N) and biases
    as (1, N) so the forward pass needs no per-call transposes.
    """
    ks = jax.random.split(key, 5)

    def uconv(k, cout, cin, kh, kw):
        fan_in = cin * kh * kw
        bound = 1.0 / np.sqrt(fan_in)
        kw_, kb_ = jax.random.split(k)
        w = jax.random.uniform(kw_, (cout, cin, kh, kw), jnp.float32, -bound, bound)
        b = jax.random.uniform(kb_, (cout,), jnp.float32, -bound, bound)
        return w, b

    def ulin(k, nout, nin):
        bound = 1.0 / np.sqrt(nin)
        kw_, kb_ = jax.random.split(k)
        w = jax.random.uniform(kw_, (nout, nin), jnp.float32, -bound, bound)
        b = jax.random.uniform(kb_, (nout,), jnp.float32, -bound, bound)
        return w.T, b.reshape(1, nout)        # pre-transposed (K, N), (1, N)

    return {
        "conv1": uconv(ks[0], 6, 1, 5, 5),
        "conv2": uconv(ks[1], 16, 6, 5, 5),
        "fc1": ulin(ks[2], 120, 5 * 5 * 16),
        "fc2": ulin(ks[3], 84, 120),
        "fc3": ulin(ks[4], 10, 84),
    }


def lenet_forward(params, x):
    w1, b1 = params["conv1"]
    w2, b2 = params["conv2"]

    x = conv_relu_pool(x, w1, b1, padding=2)   # (B, 6, 14, 14)
    x = conv_relu_pool(x, w2, b2, padding=0)   # (B, 16, 5, 5)
    x = x.reshape(x.shape[0], 16 * 5 * 5)      # matches torch .view(-1, 400)
    return mlp_head(x, params)                 # (B, 10) log-probs


if __name__ == "__main__":
    key = jax.random.PRNGKey(0)
    pkey, xkey = jax.random.split(key)
    params = init_lenet_params(pkey)
    # LeNet's fc1 (5*5*16 inputs) fixes the spatial size to 28x28, 1 channel.
    x = jax.random.normal(xkey, (2, 1, 28, 28), jnp.float32)

    out = jax.block_until_ready(jax.jit(lenet_forward)(params, x))
    assert out.shape == (2, 10)
    assert bool(jnp.all(jnp.isfinite(out)))
    print("KERNEL_OK")
</pallas_src>

<mosaic_0001>
module attributes {stable_mosaic.version = 11 : i64} {
  func.func @_conv_relu_pool_kernel(%arg0: memref<6x25xf32, #tpu.memory_space<vmem>>, %arg1: memref<6x1xf32, #tpu.memory_space<vmem>>, %arg2: memref<25x392xf32, #tpu.memory_space<vmem>>, %arg3: memref<25x392xf32, #tpu.memory_space<vmem>>, %arg4: memref<25x392xf32, #tpu.memory_space<vmem>>, %arg5: memref<25x392xf32, #tpu.memory_space<vmem>>, %arg6: memref<6x392xf32, #tpu.memory_space<vmem>>) attributes {dimension_semantics = [], scalar_prefetch = 0 : i64, scratch_operands = 0 : i64, tpu.core_type = #tpu.core_type<tc>} {
    %c0 = arith.constant 0 : index
    %c0_0 = arith.constant 0 : index
    %0 = vector.load %arg0[%c0, %c0_0] : memref<6x25xf32, #tpu.memory_space<vmem>>, vector<6x25xf32>
    %c0_1 = arith.constant 0 : index
    %c0_2 = arith.constant 0 : index
    %1 = vector.load %arg1[%c0_1, %c0_2] : memref<6x1xf32, #tpu.memory_space<vmem>>, vector<6x1xf32>
    %c0_3 = arith.constant 0 : index
    %c0_4 = arith.constant 0 : index
    %2 = vector.load %arg2[%c0_3, %c0_4] : memref<25x392xf32, #tpu.memory_space<vmem>>, vector<25x392xf32>
    %cst = arith.constant dense<0.000000e+00> : vector<6x392xf32>
    %3 = tpu.matmul %0, %2, %cst {dimension_numbers = #tpu.dot_dimension_numbers<[1], [0], [0], [1], [0, 0, 1, 1], [], []>} : vector<6x25xf32>, vector<25x392xf32>, vector<6x392xf32> -> vector<6x392xf32>
    %4 = vector.broadcast %1 : vector<6x1xf32> to vector<6x392xf32>
    %5 = arith.addf %3, %4 : vector<6x392xf32>
    %c0_5 = arith.constant 0 : index
    %c0_6 = arith.constant 0 : index
    %6 = vector.load %arg3[%c0_5, %c0_6] : memref<25x392xf32, #tpu.memory_space<vmem>>, vector<25x392xf32>
    %cst_7 = arith.constant dense<0.000000e+00> : vector<6x392xf32>
    %7 = tpu.matmul %0, %6, %cst_7 {dimension_numbers = #tpu.dot_dimension_numbers<[1], [0], [0], [1], [0, 0, 1, 1], [], []>} : vector<6x25xf32>, vector<25x392xf32>, vector<6x392xf32> -> vector<6x392xf32>
    %8 = vector.broadcast %1 : vector<6x1xf32> to vector<6x392xf32>
    %9 = arith.addf %7, %8 : vector<6x392xf32>
    %10 = arith.maximumf %5, %9 : vector<6x392xf32>
    %c0_8 = arith.constant 0 : index
    %c0_9 = arith.constant 0 : index
    %11 = vector.load %arg4[%c0_8, %c0_9] : memref<25x392xf32, #tpu.memory_space<vmem>>, vector<25x392xf32>
    %cst_10 = arith.constant dense<0.000000e+00> : vector<6x392xf32>
    %12 = tpu.matmul %0, %11, %cst_10 {dimension_numbers = #tpu.dot_dimension_numbers<[1], [0], [0], [1], [0, 0, 1, 1], [], []>} : vector<6x25xf32>, vector<25x392xf32>, vector<6x392xf32> -> vector<6x392xf32>
    %13 = vector.broadcast %1 : vector<6x1xf32> to vector<6x392xf32>
    %14 = arith.addf %12, %13 : vector<6x392xf32>
    %c0_11 = arith.constant 0 : index
    %c0_12 = arith.constant 0 : index
    %15 = vector.load %arg5[%c0_11, %c0_12] : memref<25x392xf32, #tpu.memory_space<vmem>>, vector<25x392xf32>
    %cst_13 = arith.constant dense<0.000000e+00> : vector<6x392xf32>
    %16 = tpu.matmul %0, %15, %cst_13 {dimension_numbers = #tpu.dot_dimension_numbers<[1], [0], [0], [1], [0, 0, 1, 1], [], []>} : vector<6x25xf32>, vector<25x392xf32>, vector<6x392xf32> -> vector<6x392xf32>
    %17 = vector.broadcast %1 : vector<6x1xf32> to vector<6x392xf32>
    %18 = arith.addf %16, %17 : vector<6x392xf32>
    %19 = arith.maximumf %14, %18 : vector<6x392xf32>
    %20 = arith.maximumf %10, %19 : vector<6x392xf32>
    %cst_14 = arith.constant 0.000000e+00 : f32
    %21 = vector.broadcast %cst_14 : f32 to vector<6x392xf32>
    %22 = arith.maximumf %20, %21 : vector<6x392xf32>
    %c0_15 = arith.constant 0 : index
    %c0_16 = arith.constant 0 : index
    %23 = vector.load %arg6[%c0_15, %c0_16] : memref<6x392xf32, #tpu.memory_space<vmem>>, vector<6x392xf32>
    tpu.vector_store %arg6[%c0_15, %c0_16], %22 {strides = array<i32>} : memref<6x392xf32, #tpu.memory_space<vmem>>, vector<6x392xf32>,
    return
  }
}

module attributes {stable_mosaic.version = 11 : i64} {
  func.func @_conv_relu_pool_kernel(%arg0: memref<16x150xf32, #tpu.memory_space<vmem>>, %arg1: memref<16x1xf32, #tpu.memory_space<vmem>>, %arg2: memref<150x50xf32, #tpu.memory_space<vmem>>, %arg3: memref<150x50xf32, #tpu.memory_space<vmem>>, %arg4: memref<150x50xf32, #tpu.memory_space<vmem>>, %arg5: memref<150x50xf32, #tpu.memory_space<vmem>>, %arg6: memref<16x50xf32, #tpu.memory_space<vmem>>) attributes {dimension_semantics = [], scalar_prefetch = 0 : i64, scratch_operands = 0 : i64, tpu.core_type = #tpu.core_type<tc>} {
    %c0 = arith.constant 0 : index
    %c0_0 = arith.constant 0 : index
    %0 = vector.load %arg0[%c0, %c0_0] : memref<16x150xf32, #tpu.memory_space<vmem>>, vector<16x150xf32>
    %c0_1 = arith.constant 0 : index
    %c0_2 = arith.constant 0 : index
    %1 = vector.load %arg1[%c0_1, %c0_2] : memref<16x1xf32, #tpu.memory_space<vmem>>, vector<16x1xf32>
    %c0_3 = arith.constant 0 : index
    %c0_4 = arith.constant 0 : index
    %2 = vector.load %arg2[%c0_3, %c0_4] : memref<150x50xf32, #tpu.memory_space<vmem>>, vector<150x50xf32>
    %cst = arith.constant dense<0.000000e+00> : vector<16x50xf32>
    %3 = tpu.matmul %0, %2, %cst {dimension_numbers = #tpu.dot_dimension_numbers<[1], [0], [0], [1], [0, 0, 1, 1], [], []>} : vector<16x150xf32>, vector<150x50xf32>, vector<16x50xf32> -> vector<16x50xf32>
    %4 = vector.broadcast %1 : vector<16x1xf32> to vector<16x50xf32>
    %5 = arith.addf %3, %4 : vector<16x50xf32>
    %c0_5 = arith.constant 0 : index
    %c0_6 = arith.constant 0 : index
    %6 = vector.load %arg3[%c0_5, %c0_6] : memref<150x50xf32, #tpu.memory_space<vmem>>, vector<150x50xf32>
    %cst_7 = arith.constant dense<0.000000e+00> : vector<16x50xf32>
    %7 = tpu.matmul %0, %6, %cst_7 {dimension_numbers = #tpu.dot_dimension_numbers<[1], [0], [0], [1], [0, 0, 1, 1], [], []>} : vector<16x150xf32>, vector<150x50xf32>, vector<16x50xf32> -> vector<16x50xf32>
    %8 = vector.broadcast %1 : vector<16x1xf32> to vector<16x50xf32>
    %9 = arith.addf %7, %8 : vector<16x50xf32>
    %10 = arith.maximumf %5, %9 : vector<16x50xf32>
    %c0_8 = arith.constant 0 : index
    %c0_9 = arith.constant 0 : index
    %11 = vector.load %arg4[%c0_8, %c0_9] : memref<150x50xf32, #tpu.memory_space<vmem>>, vector<150x50xf32>
    %cst_10 = arith.constant dense<0.000000e+00> : vector<16x50xf32>
    %12 = tpu.matmul %0, %11, %cst_10 {dimension_numbers = #tpu.dot_dimension_numbers<[1], [0], [0], [1], [0, 0, 1, 1], [], []>} : vector<16x150xf32>, vector<150x50xf32>, vector<16x50xf32> -> vector<16x50xf32>
    %13 = vector.broadcast %1 : vector<16x1xf32> to vector<16x50xf32>
    %14 = arith.addf %12, %13 : vector<16x50xf32>
    %c0_11 = arith.constant 0 : index
    %c0_12 = arith.constant 0 : index
    %15 = vector.load %arg5[%c0_11, %c0_12] : memref<150x50xf32, #tpu.memory_space<vmem>>, vector<150x50xf32>
    %cst_13 = arith.constant dense<0.000000e+00> : vector<16x50xf32>
    %16 = tpu.matmul %0, %15, %cst_13 {dimension_numbers = #tpu.dot_dimension_numbers<[1], [0], [0], [1], [0, 0, 1, 1], [], []>} : vector<16x150xf32>, vector<150x50xf32>, vector<16x50xf32> -> vector<16x50xf32>
    %17 = vector.broadcast %1 : vector<16x1xf32> to vector<16x50xf32>
    %18 = arith.addf %16, %17 : vector<16x50xf32>
    %19 = arith.maximumf %14, %18 : vector<16x50xf32>
    %20 = arith.maximumf %10, %19 : vector<16x50xf32>
    %cst_14 = arith.constant 0.000000e+00 : f32
    %21 = vector.broadcast %cst_14 : f32 to vector<16x50xf32>
    %22 = arith.maximumf %20, %21 : vector<16x50xf32>
    %c0_15 = arith.constant 0 : index
    %c0_16 = arith.constant 0 : index
    %23 = vector.load %arg6[%c0_15, %c0_16] : memref<16x50xf32, #tpu.memory_space<vmem>>, vector<16x50xf32>
    tpu.vector_store %arg6[%c0_15, %c0_16], %22 {strides = array<i32>} : memref<16x50xf32, #tpu.memory_space<vmem>>, vector<16x50xf32>,
    return
  }
}

module attributes {stable_mosaic.version = 11 : i64} {
  func.func @_mlp_head_kernel(%arg0: memref<2x400xf32, #tpu.memory_space<vmem>>, %arg1: memref<400x120xf32, #tpu.memory_space<vmem>>, %arg2: memref<1x120xf32, #tpu.memory_space<vmem>>, %arg3: memref<120x84xf32, #tpu.memory_space<vmem>>, %arg4: memref<1x84xf32, #tpu.memory_space<vmem>>, %arg5: memref<84x10xf32, #tpu.memory_space<vmem>>, %arg6: memref<1x10xf32, #tpu.memory_space<vmem>>, %arg7: memref<2x10xf32, #tpu.memory_space<vmem>>) attributes {dimension_semantics = [], scalar_prefetch = 0 : i64, scratch_operands = 0 : i64, tpu.core_type = #tpu.core_type<tc>} {
    %c0 = arith.constant 0 : index
    %c0_0 = arith.constant 0 : index
    %0 = vector.load %arg0[%c0, %c0_0] : memref<2x400xf32, #tpu.memory_space<vmem>>, vector<2x400xf32>
    %c0_1 = arith.constant 0 : index
    %c0_2 = arith.constant 0 : index
    %1 = vector.load %arg1[%c0_1, %c0_2] : memref<400x120xf32, #tpu.memory_space<vmem>>, vector<400x120xf32>
    %cst = arith.constant dense<0.000000e+00> : vector<2x120xf32>
    %2 = tpu.matmul %0, %1, %cst {dimension_numbers = #tpu.dot_dimension_numbers<[1], [0], [0], [1], [0, 0, 1, 1], [], []>} : vector<2x400xf32>, vector<400x120xf32>, vector<2x120xf32> -> vector<2x120xf32>
    %c0_3 = arith.constant 0 : index
    %c0_4 = arith.constant 0 : index
    %3 = vector.load %arg2[%c0_3, %c0_4] : memref<1x120xf32, #tpu.memory_space<vmem>>, vector<1x120xf32>
    %4 = vector.broadcast %3 : vector<1x120xf32> to vector<2x120xf32>
    %5 = arith.addf %2, %4 : vector<2x120xf32>
    %cst_5 = arith.constant 0.000000e+00 : f32
    %6 = vector.broadcast %cst_5 : f32 to vector<2x120xf32>
    %7 = arith.maximumf %5, %6 : vector<2x120xf32>
    %c0_6 = arith.constant 0 : index
    %c0_7 = arith.constant 0 : index
    %8 = vector.load %arg3[%c0_6, %c0_7] : memref<120x84xf32, #tpu.memory_space<vmem>>, vector<120x84xf32>
    %cst_8 = arith.constant dense<0.000000e+00> : vector<2x84xf32>
    %9 = tpu.matmul %7, %8, %cst_8 {dimension_numbers = #tpu.dot_dimension_numbers<[1], [0], [0], [1], [0, 0, 1, 1], [], []>} : vector<2x120xf32>, vector<120x84xf32>, vector<2x84xf32> -> vector<2x84xf32>
    %c0_9 = arith.constant 0 : index
    %c0_10 = arith.constant 0 : index
    %10 = vector.load %arg4[%c0_9, %c0_10] : memref<1x84xf32, #tpu.memory_space<vmem>>, vector<1x84xf32>
    %11 = vector.broadcast %10 : vector<1x84xf32> to vector<2x84xf32>
    %12 = arith.addf %9, %11 : vector<2x84xf32>
    %c0_11 = arith.constant 0 : index
    %c0_12 = arith.constant 0 : index
    %13 = vector.load %arg5[%c0_11, %c0_12] : memref<84x10xf32, #tpu.memory_space<vmem>>, vector<84x10xf32>
    %cst_13 = arith.constant dense<0.000000e+00> : vector<2x10xf32>
    %14 = tpu.matmul %12, %13, %cst_13 {dimension_numbers = #tpu.dot_dimension_numbers<[1], [0], [0], [1], [0, 0, 1, 1], [], []>} : vector<2x84xf32>, vector<84x10xf32>, vector<2x10xf32> -> vector<2x10xf32>
    %c0_14 = arith.constant 0 : index
    %c0_15 = arith.constant 0 : index
    %15 = vector.load %arg6[%c0_14, %c0_15] : memref<1x10xf32, #tpu.memory_space<vmem>>, vector<1x10xf32>
    %16 = vector.broadcast %15 : vector<1x10xf32> to vector<2x10xf32>
    %17 = arith.addf %14, %16 : vector<2x10xf32>
    %cst_16 = arith.constant dense<0xFF800000> : vector<2xf32>
    %18 = vector.multi_reduction <maximumf>, %17, %cst_16 [1] : vector<2x10xf32> to vector<2xf32>
    %19 = vector.shape_cast %18 : vector<2xf32> to vector<2x1xf32>
    %20 = vector.broadcast %19 : vector<2x1xf32> to vector<2x10xf32>
    %21 = arith.subf %17, %20 : vector<2x10xf32>
    %22 = math.exp %21 : vector<2x10xf32>
    %cst_17 = arith.constant dense<0.000000e+00> : vector<2xf32>
    %23 = vector.multi_reduction <add>, %22, %cst_17 [1] : vector<2x10xf32> to vector<2xf32>
    %24 = vector.shape_cast %23 : vector<2xf32> to vector<2x1xf32>
    %25 = math.log %24 : vector<2x1xf32>
    %26 = vector.broadcast %25 : vector<2x1xf32> to vector<2x10xf32>
    %27 = arith.subf %21, %26 : vector<2x10xf32>
    %c0_18 = arith.constant 0 : index
    %c0_19 = arith.constant 0 : index
    %28 = vector.load %arg7[%c0_18, %c0_19] : memref<2x10xf32, #tpu.memory_space<vmem>>, vector<2x10xf32>
    tpu.vector_store %arg7[%c0_18, %c0_19], %27 {strides = array<i32>} : memref<2x10xf32, #tpu.memory_space<vmem>>, vector<2x10xf32>,
    return
  }
}

</mosaic_0001>

<bundles_post_ra>
// kernel: lenet_forward.3
= control target key start
LH: loop header
LB: loop body
LE: loop exit
PB: predicated region body
PF: predicated region fallthrough
CT: control target
= control target key end

     0   :  { %vm50_vm0 = vcmask 1040384   ;;  %v526_v3 = vmov 0   ;;  %vm46_vm1 = vcmask 203776   ;;  %vm486_vm2 = vcmask 62464   ;;  %s822_s2 = inlined_call_operand.vmem [shape: f32[25,392], index: 2, kind: input, shape index: {}]   ;;  %s823_s0 = inlined_call_operand.vmem [shape: f32[6,25], index: 0, kind: input, shape index: {}]   ;;  %s824_s3 = inlined_call_operand.vmem [shape: f32[25,392], index: 3, kind: input, shape index: {}]   ;;  %s825_s4 = inlined_call_operand.vmem [shape: f32[25,392], index: 4, kind: input, shape index: {}]   ;;  %s826_s5 = inlined_call_operand.vmem [shape: f32[25,392], index: 5, kind: input, shape index: {}]   ;;  %s827_s1 = inlined_call_operand.vmem [shape: f32[6,1], index: 1, kind: input, shape index: {}]   ;;  %s828_s6 = inlined_call_operand.vmem [shape: f32[6,392], index: 6, kind: output, shape index: {}]  }
   0x1   :  { %v37_v0 = vld [vmem:[%s822_s2 + $0x60] sm:$0x1]  ;;  %v38_v1 = vld [vmem:[%s822_s2 + $0x68] sm:$0x1]  ;;  %v39_v2 = vld [vmem:[%s822_s2 + $0x70] sm:$0x1]  ;;  %525 = vset.pattern.permute.xlu0 %v526_v3 }
   0x2   :  { %492 = vmatpush.msk.msra.mxu0 %vm50_vm0, %v37_v0  ;;  %494 = vmatpush.msk.msra.mxu1 %vm50_vm0, %v38_v1  ;;  %v40_v4 = vld [vmem:[%s822_s2 + $0x78] sm:$0x1]  ;;  %v33_v5 = vld [vmem:[%s822_s2 + $0x40] sm:$0xff]  ;;  %v34_v6 = vld [vmem:[%s822_s2 + $0x48] sm:$0xff] }
   0x3   :  { %496 = vmatpush.msk.msra.mxu2 %vm50_vm0, %v39_v2  ;;  %498 = vmatpush.msk.msra.mxu3 %vm50_vm0, %v40_v4  ;;  %v35_v7 = vld [vmem:[%s822_s2 + $0x50] sm:$0xff]  ;;  %v36_v8 = vld [vmem:[%s822_s2 + $0x58] sm:$0xff]  ;;  %v29_v9 = vld [vmem:[%s822_s2 + $0x20] sm:$0xff] }
   0x4   :  { %76 = vmatpush.msra.mxu0 %v33_v5  ;;  %96 = vmatpush.msra.mxu1 %v34_v6  ;;  %v30_v10 = vld [vmem:[%s822_s2 + $0x28] sm:$0xff]  ;;  %v31_v11 = vld [vmem:[%s822_s2 + $0x30] sm:$0xff]  ;;  %v32_v12 = vld [vmem:[%s822_s2 + $0x38] sm:$0xff] }
   0x5   :  { %116 = vmatpush.msra.mxu2 %v35_v7  ;;  %136 = vmatpush.msra.mxu3 %v36_v8  ;;  %v25_v13 = vld [vmem:[%s822_s2] sm:$0xff]  ;;  %v26_v14 = vld [vmem:[%s822_s2 + $0x8] sm:$0xff]  ;;  %v27_v15 = vld [vmem:[%s822_s2 + $0x10] sm:$0xff] }
   0x6   :  { %77 = vmatpush.msra.mxu0 %v29_v9  ;;  %97 = vmatpush.msra.mxu1 %v30_v10  ;;  %v28_v16 = vld [vmem:[%s822_s2 + $0x18] sm:$0xff]  ;;  %v617_v17 = vld [vmem:[%s823_s0] sm:$0x3f]  ;;  %v157_v18 = vld [vmem:[%s824_s3 + $0x70] sm:$0x1] }
   0x7   :  { %117 = vmatpush.msra.mxu2 %v31_v11  ;;  %137 = vmatpush.msra.mxu3 %v32_v12  ;;  %v158_v19 = vld [vmem:[%s824_s3 + $0x78] sm:$0x1]  ;;  %v155_v20 = vld [vmem:[%s824_s3 + $0x60] sm:$0x1]  ;;  %v156_v21 = vld [vmem:[%s824_s3 + $0x68] sm:$0x1] }
   0x8   :  { %78 = vmatpush.msra.mxu0 %v25_v13  ;;  %98 = vmatpush.msra.mxu1 %v26_v14  ;;  %v153_v22 = vld [vmem:[%s824_s3 + $0x50] sm:$0xff]  ;;  %v154_v23 = vld [vmem:[%s824_s3 + $0x58] sm:$0xff]  ;;  %v151_v24 = vld [vmem:[%s824_s3 + $0x40] sm:$0xff] }
   0x9   :  { %118 = vmatpush.msra.mxu2 %v27_v15  ;;  %138 = vmatpush.msra.mxu3 %v28_v16  ;;  %v152_v25 = vld [vmem:[%s824_s3 + $0x48] sm:$0xff]  ;;  %v149_v26 = vld [vmem:[%s824_s3 + $0x30] sm:$0xff]  ;;  %v150_v27 = vld [vmem:[%s824_s3 + $0x38] sm:$0xff] }
   0xa   :  { %493 = vmatmul.msk.f32.vlgmr.msra.gmra.mxu0 %vm46_vm1, %v617_v17  ;;  %495 = vmatmul.msk.f32.vlgmr.msra.gmra.mxu1 %vm46_vm1, %v617_v17  ;;  %v147_v28 = vld [vmem:[%s824_s3 + $0x20] sm:$0xff]  ;;  %v148_v29 = vld [vmem:[%s824_s3 + $0x28] sm:$0xff]  ;;  %v145_v30 = vld [vmem:[%s824_s3 + $0x10] sm:$0xff] }
   0xb   :  { %497 = vmatmul.msk.f32.vlgmr.msra.gmra.mxu2 %vm46_vm1, %v617_v17  ;;  %499 = vmatmul.msk.f32.vlgmr.msra.gmra.mxu3 %vm46_vm1, %v617_v17  ;;  %v146_v31 = vld [vmem:[%s824_s3 + $0x18] sm:$0xff]  ;;  %v143_v32 = vld [vmem:[%s824_s3] sm:$0xff]  ;;  %v144_v33 = vld [vmem:[%s824_s3 + $0x8] sm:$0xff] }
   0xc   :  { %504 = vmatpush.msk.msrb.mxu2 %vm50_vm0, %v157_v18  ;;  %506 = vmatpush.msk.msrb.mxu3 %vm50_vm0, %v158_v19  ;;  %v269_v34 = vld [vmem:[%s825_s4 + $0x70] sm:$0x1]  ;;  %v270_v35 = vld [vmem:[%s825_s4 + $0x78] sm:$0x1]  ;;  %v267_v36 = vld [vmem:[%s825_s4 + $0x60] sm:$0x1] }
   0xd   :  { %500 = vmatpush.msk.msrb.mxu0 %vm50_vm0, %v155_v20  ;;  %502 = vmatpush.msk.msrb.mxu1 %vm50_vm0, %v156_v21  ;;  %v268_v37 = vld [vmem:[%s825_s4 + $0x68] sm:$0x1]  ;;  %v265_v38 = vld [vmem:[%s825_s4 + $0x50] sm:$0xff]  ;;  %v266_v39 = vld [vmem:[%s825_s4 + $0x58] sm:$0xff] }
   0xe   :  { %224 = vmatpush.msrb.mxu2 %v153_v22  ;;  %244 = vmatpush.msrb.mxu3 %v154_v23  ;;  %v263_v40 = vld [vmem:[%s825_s4 + $0x40] sm:$0xff]  ;;  %v264_v41 = vld [vmem:[%s825_s4 + $0x48] sm:$0xff]  ;;  %v261_v42 = vld [vmem:[%s825_s4 + $0x30] sm:$0xff] }
   0xf   :  { %184 = vmatpush.msrb.mxu0 %v151_v24  ;;  %204 = vmatpush.msrb.mxu1 %v152_v25  ;;  %v262_v43 = vld [vmem:[%s825_s4 + $0x38] sm:$0xff]  ;;  %v259_v44 = vld [vmem:[%s825_s4 + $0x20] sm:$0xff]  ;;  %v260_v45 = vld [vmem:[%s825_s4 + $0x28] sm:$0xff] }
  0x10   :  { %225 = vmatpush.msrb.mxu2 %v149_v26  ;;  %245 = vmatpush.msrb.mxu3 %v150_v27  ;;  %v257_v46 = vld [vmem:[%s825_s4 + $0x10] sm:$0xff]  ;;  %v258_v47 = vld [vmem:[%s825_s4 + $0x18] sm:$0xff]  ;;  %v255_v48 = vld [vmem:[%s825_s4] sm:$0xff] }
  0x11   :  { %185 = vmatpush.msrb.mxu0 %v147_v28  ;;  %205 = vmatpush.msrb.mxu1 %v148_v29  ;;  %v256_v49 = vld [vmem:[%s825_s4 + $0x8] sm:$0xff]  ;;  %v377_v50 = vld [vmem:[%s826_s5 + $0x70] sm:$0x1]  ;;  %v378_v51 = vld [vmem:[%s826_s5 + $0x78] sm:$0x1] }
  0x12   :  { %226 = vmatpush.msrb.mxu2 %v145_v30  ;;  %246 = vmatpush.msrb.mxu3 %v146_v31  ;;  %v24_v52 = vld [vmem:[%s827_s1] sm:$0x3f]  ;;  %v376_v54 = vld [vmem:[%s826_s5 + $0x68] sm:$0x1]  ;;  %v373_v55 = vld [vmem:[%s826_s5 + $0x50] sm:$0xff] }
  0x13   :  { %186 = vmatpush.msrb.mxu0 %v143_v32  ;;  %206 = vmatpush.msrb.mxu1 %v144_v33  ;;  %v375_v53 = vld [vmem:[%s826_s5 + $0x60] sm:$0x1]  ;;  %v374_v56 = vld [vmem:[%s826_s5 + $0x58] sm:$0xff]  ;;  %v372_v58 = vld [vmem:[%s826_s5 + $0x48] sm:$0xff] }
  0x14   :  { %501 = vmatmul.msk.f32.vlgmr.msrb.gmra.mxu0 %vm46_vm1, %v617_v17  ;;  %503 = vmatmul.msk.f32.vlgmr.msrb.gmra.mxu1 %vm46_vm1, %v617_v17  ;;  %v371_v57 = vld [vmem:[%s826_s5 + $0x40] sm:$0xff]  ;;  %v369_v59 = vld [vmem:[%s826_s5 + $0x30] sm:$0xff]  ;;  %v370_v60 = vld [vmem:[%s826_s5 + $0x38] sm:$0xff] }
  0x15   :  { %505 = vmatmul.msk.f32.vlgmr.msrb.gmra.mxu2 %vm46_vm1, %v617_v17  ;;  %507 = vmatmul.msk.f32.vlgmr.msrb.gmra.mxu3 %vm46_vm1, %v617_v17  ;;  %v367_v61 = vld [vmem:[%s826_s5 + $0x20] sm:$0xff]  ;;  %v368_v62 = vld [vmem:[%s826_s5 + $0x28] sm:$0xff]  ;;  %v365_v63 = vld [vmem:[%s826_s5 + $0x10] sm:$0xff] }
  0x16   :  { %512 = vmatpush.msk.msra.mxu2 %vm50_vm0, %v269_v34  ;;  %514 = vmatpush.msk.msra.mxu3 %vm50_vm0, %v270_v35  ;;  %v366_v0 = vld [vmem:[%s826_s5 + $0x18] sm:$0xff]  ;;  %v363_v1 = vld [vmem:[%s826_s5] sm:$0xff]  ;;  %v364_v2 = vld [vmem:[%s826_s5 + $0x8] sm:$0xff] }
  0x17   :  { %508 = vmatpush.msk.msra.mxu0 %vm50_vm0, %v267_v36  ;;  %510 = vmatpush.msk.msra.mxu1 %vm50_vm0, %v268_v37 }
  0x18   :  { %336 = vmatpush.msra.mxu2 %v265_v38  ;;  %356 = vmatpush.msra.mxu3 %v266_v39 }
  0x19   :  { %296 = vmatpush.msra.mxu0 %v263_v40  ;;  %316 = vmatpush.msra.mxu1 %v264_v41 }
  0x1a   :  { %337 = vmatpush.msra.mxu2 %v261_v42  ;;  %357 = vmatpush.msra.mxu3 %v262_v43 }
  0x1b   :  { %297 = vmatpush.msra.mxu0 %v259_v44  ;;  %317 = vmatpush.msra.mxu1 %v260_v45 }
  0x1c   :  { %338 = vmatpush.msra.mxu2 %v257_v46  ;;  %358 = vmatpush.msra.mxu3 %v258_v47 }
  0x1d   :  { %298 = vmatpush.msra.mxu0 %v255_v48  ;;  %318 = vmatpush.msra.mxu1 %v256_v49 }
  0x1e   :  { %509 = vmatmul.msk.f32.vlgmr.msra.gmra.mxu0 %vm46_vm1, %v617_v17  ;;  %511 = vmatmul.msk.f32.vlgmr.msra.gmra.mxu1 %vm46_vm1, %v617_v17 }
  0x1f   :  { %513 = vmatmul.msk.f32.vlgmr.msra.gmra.mxu2 %vm46_vm1, %v617_v17  ;;  %515 = vmatmul.msk.f32.vlgmr.msra.gmra.mxu3 %vm46_vm1, %v617_v17 }
  0x20   :  { %520 = vmatpush.msk.msrb.mxu2 %vm50_vm0, %v377_v50  ;;  %522 = vmatpush.msk.msrb.mxu3 %vm50_vm0, %v378_v51 }
  0x21   :  { %43 = vperm.xlu0 %525, %v24_v52   ;;  %516 = vmatpush.msk.msrb.mxu0 %vm50_vm0, %v375_v53 }
  0x22   :  { %518 = vmatpush.msk.msrb.mxu1 %vm50_vm0, %v376_v54  ;;  %444 = vmatpush.msrb.mxu2 %v373_v55 }
  0x23   :  { %464 = vmatpush.msrb.mxu3 %v374_v56  ;;  %404 = vmatpush.msrb.mxu0 %v371_v57 }
  0x24   :  { %424 = vmatpush.msrb.mxu1 %v372_v58  ;;  %445 = vmatpush.msrb.mxu2 %v369_v59 }
  0x25   :  { %465 = vmatpush.msrb.mxu3 %v370_v60  ;;  %405 = vmatpush.msrb.mxu0 %v367_v61 }
  0x26   :  { %425 = vmatpush.msrb.mxu1 %v368_v62  ;;  %446 = vmatpush.msrb.mxu2 %v365_v63 }
  0x27   :  { %466 = vmatpush.msrb.mxu3 %v366_v0  ;;  %406 = vmatpush.msrb.mxu0 %v363_v1 }
  0x28   :  { %426 = vmatpush.msrb.mxu1 %v364_v2  ;;  %517 = vmatmul.msk.f32.vlgmr.msrb.gmra.mxu0 %vm46_vm1, %v617_v17 }
  0x29   :  { %519 = vmatmul.msk.f32.vlgmr.msrb.gmra.mxu1 %vm46_vm1, %v617_v17  ;;  %521 = vmatmul.msk.f32.vlgmr.msrb.gmra.mxu2 %vm46_vm1, %v617_v17 }
  0x2a   :  { %523 = vmatmul.msk.f32.vlgmr.msrb.gmra.mxu3 %vm46_vm1, %v617_v17 }
  0x87   :  { %v80_v3 = vpop.f32.mrf.mxu0  ;;  %v100_v4 = vpop.f32.mrf.mxu1 }
  0x8e   :  { %v120_v5 = vpop.f32.mrf.mxu2  ;;  %v140_v6 = vpop.f32.mrf.mxu3 }
  0x91   :  { %v188_v7 = vpop.f32.mrf.mxu0  ;;  %v208_v8 = vpop.f32.mrf.mxu1 }
  0x93   :  { %v44_v14 = vpop.permute.xlu0 %43 }
  0x94   :  { %v189_v16 = vadd.f32 %v188_v7, %v44_v14  ;;  %v209_v18 = vadd.f32 %v208_v8, %v44_v14  ;;  %v81_v20 = vadd.f32 %v80_v3, %v44_v14  ;;  %v101_v23 = vadd.f32 %v100_v4, %v44_v14 }
  0x95   :  { %v121_v36 = vadd.f32 %v120_v5, %v44_v14  ;;  %v141_v41 = vadd.f32 %v140_v6, %v44_v14 }
  0x96   :  { %v251_v26 = vmax.f32 %v81_v20, %v189_v16  ;;  %v252_v28 = vmax.f32 %v101_v23, %v209_v18 }
  0x98   :  { %v228_v9 = vpop.f32.mrf.mxu2  ;;  %v248_v10 = vpop.f32.mrf.mxu3 }
  0x99   :  { %v229_v31 = vadd.f32 %v228_v9, %v44_v14  ;;  %v249_v33 = vadd.f32 %v248_v10, %v44_v14 }
  0x9b   :  { %v300_v11 = vpop.f32.mrf.mxu0  ;;  %v320_v12 = vpop.f32.mrf.mxu1  ;;  %v253_v44 = vmax.f32 %v121_v36, %v229_v31  ;;  %v254_v46 = vmax.f32 %v141_v41, %v249_v33 }
  0x9c   :  { %v301_v21 = vadd.f32 %v300_v11, %v44_v14  ;;  %v321_v24 = vadd.f32 %v320_v12, %v44_v14 }
  0xa2   :  { %v340_v13 = vpop.f32.mrf.mxu2  ;;  %v360_v15 = vpop.f32.mrf.mxu3 }
  0xa3   :  { %v341_v37 = vadd.f32 %v340_v13, %v44_v14  ;;  %v361_v42 = vadd.f32 %v360_v15, %v44_v14 }
  0xa5   :  { %v408_v19 = vpop.f32.mrf.mxu0 }
  0xa6   :  { %v409_v22 = vadd.f32 %v408_v19, %v44_v14  ;;  %v428_v17 = vpop.f32.mrf.mxu1 }
  0xa7   :  { %v429_v25 = vadd.f32 %v428_v17, %v44_v14 }
  0xa8   :  { %v471_v27 = vmax.f32 %v301_v21, %v409_v22 }
  0xa9   :  { %v472_v29 = vmax.f32 %v321_v24, %v429_v25 }
  0xaa   :  { %v475_v30 = vmax.f32 %v251_v26, %v471_v27 }
  0xab   :  { %v476_v32 = vmax.f32 %v252_v28, %v472_v29 }
  0xac   :  { %v479_v34 = vmax.f32 %v475_v30, 0.0  ;;  %v448_v35 = vpop.f32.mrf.mxu2 }
  0xad   :  { %v480_v38 = vmax.f32 %v476_v32, 0.0  ;;  %v449_v39 = vadd.f32 %v448_v35, %v44_v14  ;;  %v468_v40 = vpop.f32.mrf.mxu3 }
  0xae   :  { %483 = vst [vmem:[%s828_s6] sm:$0x3f] %v479_v34  ;;  %v469_v43 = vadd.f32 %v468_v40, %v44_v14 }
  0xaf   :  { %484 = vst [vmem:[%s828_s6 + $0x8] sm:$0x3f] %v480_v38  ;;  %v473_v45 = vmax.f32 %v341_v37, %v449_v39 }
  0xb0   :  { %v474_v47 = vmax.f32 %v361_v42, %v469_v43 }
  0xb1   :  { %v477_v48 = vmax.f32 %v253_v44, %v473_v45 }
  0xb2   :  { %v478_v49 = vmax.f32 %v254_v46, %v474_v47 }
  0xb3   :  { %v481_v50 = vmax.f32 %v477_v48, 0.0 }
  0xb4   :  { %v482_v51 = vmax.f32 %v478_v49, 0.0 }
  0xb5   :  { %485 = vst [vmem:[%s828_s6 + $0x10] sm:$0x3f] %v481_v50 }
  0xb6   :  { %487 = vst.msk [vmem:[%s828_s6 + $0x18] sm:$0x3f] %vm486_vm2, %v482_v51 }

// kernel: lenet_forward.4
= control target key start
LH: loop header
LB: loop body
LE: loop exit
PB: predicated region body
PF: predicated region fallthrough
CT: control target
= control target key end

     0   :  { %vm65_vm0 = vcmask 1045504   ;;  %vm58_vm1 = vcmask 179200   ;;  %vm327_vm2 = vcmask 408576   ;;  %s680_s2 = inlined_call_operand.vmem [shape: f32[150,50], index: 2, kind: input, shape index: {}]   ;;  %s681_s3 = inlined_call_operand.vmem [shape: f32[150,50], index: 3, kind: input, shape index: {}]   ;;  %s682_s4 = inlined_call_operand.vmem [shape: f32[150,50], index: 4, kind: input, shape index: {}]   ;;  %s683_s0 = inlined_call_operand.vmem [shape: f32[16,150], index: 0, kind: input, shape index: {}]   ;;  %s684_s5 = inlined_call_operand.vmem [shape: f32[150,50], index: 5, kind: input, shape index: {}]   ;;  %s685_s1 = inlined_call_operand.vmem [shape: f32[16,1], index: 1, kind: input, shape index: {}]   ;;  %s686_s6 = inlined_call_operand.vmem [shape: f32[16,50], index: 6, kind: output, shape index: {}]  }
   0x1   :  { %v44_v0 = vld [vmem:[%s680_s2 + $0x78] sm:$0xff]  ;;  %v47_v1 = vld [vmem:[%s680_s2 + $0x90] sm:$0x3f]  ;;  %v46_v5 = vld [vmem:[%s680_s2 + $0x88] sm:$0xff] }
   0x2   :  { %v130_v2 = vld [vmem:[%s681_s3 + $0x78] sm:$0xff]  ;;  %69 = vmatpush.msra.mxu0 %v44_v0  ;;  %334 = vmatpush.msk.msra.mxu1 %vm65_vm0, %v47_v1  ;;  %v403_v3 = vld [vmem:[%s681_s3 + $0x90] sm:$0x3f]  ;;  %v419_v7 = vld [vmem:[%s681_s3 + $0x88] sm:$0xff] }
   0x3   :  { %v43_v4 = vld [vmem:[%s680_s2 + $0x70] sm:$0xff]  ;;  %137 = vmatpush.msra.mxu2 %v130_v2  ;;  %346 = vmatpush.msk.msra.mxu3 %vm65_vm0, %v403_v3  ;;  %v42_v8 = vld [vmem:[%s680_s2 + $0x68] sm:$0xff]  ;;  %v45_v9 = vld [vmem:[%s680_s2 + $0x80] sm:$0xff] }
   0x4   :  { %v129_v6 = vld [vmem:[%s681_s3 + $0x70] sm:$0xff]  ;;  %70 = vmatpush.msra.mxu0 %v43_v4  ;;  %106 = vmatpush.msra.mxu1 %v46_v5  ;;  %v128_v10 = vld [vmem:[%s681_s3 + $0x68] sm:$0xff]  ;;  %v433_v11 = vld [vmem:[%s681_s3 + $0x80] sm:$0xff] }
   0x5   :  { %138 = vmatpush.msra.mxu2 %v129_v6  ;;  %347 = vmatpush.msra.mxu3 %v419_v7  ;;  %v200_v12 = vld [vmem:[%s682_s4 + $0x78] sm:$0xff]  ;;  %v203_v13 = vld [vmem:[%s682_s4 + $0x90] sm:$0x3f]  ;;  %v41_v14 = vld [vmem:[%s680_s2 + $0x60] sm:$0xff] }
   0x6   :  { %71 = vmatpush.msra.mxu0 %v42_v8  ;;  %107 = vmatpush.msra.mxu1 %v45_v9  ;;  %v127_v15 = vld [vmem:[%s681_s3 + $0x60] sm:$0xff]  ;;  %v199_v16 = vld [vmem:[%s682_s4 + $0x70] sm:$0xff]  ;;  %v202_v17 = vld [vmem:[%s682_s4 + $0x88] sm:$0xff] }
   0x7   :  { %139 = vmatpush.msra.mxu2 %v128_v10  ;;  %348 = vmatpush.msra.mxu3 %v433_v11  ;;  %v40_v18 = vld [vmem:[%s680_s2 + $0x58] sm:$0xff]  ;;  %v198_v20 = vld [vmem:[%s682_s4 + $0x68] sm:$0xff]  ;;  %v201_v21 = vld [vmem:[%s682_s4 + $0x80] sm:$0xff] }
   0x8   :  { %207 = vmatpush.msrb.mxu1 %v200_v12  ;;  %v126_v19 = vld [vmem:[%s681_s3 + $0x58] sm:$0xff]  ;;  %72 = vmatpush.msra.mxu0 %v41_v14  ;;  %v39_v22 = vld [vmem:[%s680_s2 + $0x50] sm:$0xff]  ;;  %v197_v25 = vld [vmem:[%s682_s4 + $0x60] sm:$0xff] }
   0x9   :  { %340 = vmatpush.msk.msrb.mxu3 %vm65_vm0, %v203_v13  ;;  %140 = vmatpush.msra.mxu2 %v127_v15  ;;  %v125_v23 = vld [vmem:[%s681_s3 + $0x50] sm:$0xff]  ;;  %v477_v24 = vld [vmem:[%s683_s0 + $0x18] sm:$0xff]  ;;  %v38_v27 = vld [vmem:[%s680_s2 + $0x48] sm:$0xff]  ;;  %v354_v13 = vmov 0  }
   0xa   :  { %208 = vmatpush.msrb.mxu1 %v199_v16  ;;  %73 = vmatpush.msra.mxu0 %v40_v18  ;;  %v268_v26 = vld [vmem:[%s684_s5 + $0x78] sm:$0xff]  ;;  %v124_v28 = vld [vmem:[%s681_s3 + $0x48] sm:$0xff]  ;;  %v267_v30 = vld [vmem:[%s684_s5 + $0x70] sm:$0xff] }
   0xb   :  { %244 = vmatpush.msrb.mxu3 %v202_v17  ;;  %141 = vmatpush.msra.mxu2 %v126_v19  ;;  %v196_v29 = vld [vmem:[%s682_s4 + $0x58] sm:$0xff]  ;;  %v37_v31 = vld [vmem:[%s680_s2 + $0x40] sm:$0xff]  ;;  %v195_v33 = vld [vmem:[%s682_s4 + $0x50] sm:$0xff] }
   0xc   :  { %209 = vmatpush.msrb.mxu1 %v198_v20  ;;  %74 = vmatpush.msra.mxu0 %v39_v22  ;;  %v123_v32 = vld [vmem:[%s681_s3 + $0x40] sm:$0xff]  ;;  %v266_v34 = vld [vmem:[%s684_s5 + $0x68] sm:$0xff]  ;;  %v36_v35 = vld [vmem:[%s680_s2 + $0x38] sm:$0xff] }
   0xd   :  { %245 = vmatpush.msrb.mxu3 %v201_v21  ;;  %142 = vmatpush.msra.mxu2 %v125_v23  ;;  %v122_v36 = vld [vmem:[%s681_s3 + $0x38] sm:$0xff]  ;;  %v194_v37 = vld [vmem:[%s682_s4 + $0x48] sm:$0xff]  ;;  %v265_v38 = vld [vmem:[%s684_s5 + $0x60] sm:$0xff] }
   0xe   :  { %339 = vmatmul.msk.f32.vlgmr.msra.gmra.mxu3 %vm58_vm1, %v477_v24  ;;  %210 = vmatpush.msrb.mxu1 %v197_v25  ;;  %v35_v39 = vld [vmem:[%s680_s2 + $0x30] sm:$0xff]  ;;  %v193_v41 = vld [vmem:[%s682_s4 + $0x40] sm:$0xff]  ;;  %v264_v42 = vld [vmem:[%s684_s5 + $0x58] sm:$0xff] }
   0xf   :  { %275 = vmatpush.msra.mxu3 %v268_v26  ;;  %75 = vmatpush.msra.mxu0 %v38_v27  ;;  %v121_v40 = vld [vmem:[%s681_s3 + $0x30] sm:$0xff]  ;;  %v34_v43 = vld [vmem:[%s680_s2 + $0x28] sm:$0xff]  ;;  %v192_v47 = vld [vmem:[%s682_s4 + $0x38] sm:$0xff] }
  0x10   :  { %143 = vmatpush.msra.mxu2 %v124_v28  ;;  %211 = vmatpush.msrb.mxu1 %v196_v29  ;;  %v541_v44 = vld [vmem:[%s683_s0 + $0x8] sm:$0xff]  ;;  %v263_v46 = vld [vmem:[%s684_s5 + $0x50] sm:$0xff]  ;;  %v33_v48 = vld [vmem:[%s680_s2 + $0x20] sm:$0xff] }
  0x11   :  { %276 = vmatpush.msra.mxu3 %v267_v30  ;;  %76 = vmatpush.msra.mxu0 %v37_v31  ;;  %v120_v45 = vld [vmem:[%s681_s3 + $0x28] sm:$0xff]  ;;  %v119_v49 = vld [vmem:[%s681_s3 + $0x20] sm:$0xff]  ;;  %v191_v51 = vld [vmem:[%s682_s4 + $0x30] sm:$0xff] }
  0x12   :  { %144 = vmatpush.msra.mxu2 %v123_v32  ;;  %212 = vmatpush.msrb.mxu1 %v195_v33  ;;  %v262_v50 = vld [vmem:[%s684_s5 + $0x48] sm:$0xff]  ;;  %v32_v52 = vld [vmem:[%s680_s2 + $0x18] sm:$0xff]  ;;  %v261_v54 = vld [vmem:[%s684_s5 + $0x40] sm:$0xff] }
  0x13   :  { %277 = vmatpush.msra.mxu3 %v266_v34  ;;  %77 = vmatpush.msra.mxu0 %v36_v35  ;;  %v118_v53 = vld [vmem:[%s681_s3 + $0x18] sm:$0xff]  ;;  %v190_v55 = vld [vmem:[%s682_s4 + $0x28] sm:$0xff]  ;;  %v31_v56 = vld [vmem:[%s680_s2 + $0x10] sm:$0xff] }
  0x14   :  { %145 = vmatpush.msra.mxu2 %v122_v36  ;;  %213 = vmatpush.msrb.mxu1 %v194_v37  ;;  %v117_v57 = vld [vmem:[%s681_s3 + $0x10] sm:$0xff]  ;;  %v260_v58 = vld [vmem:[%s684_s5 + $0x38] sm:$0xff]  ;;  %v189_v59 = vld [vmem:[%s682_s4 + $0x20] sm:$0xff] }
  0x15   :  { %278 = vmatpush.msra.mxu3 %v265_v38  ;;  %78 = vmatpush.msra.mxu0 %v35_v39  ;;  %v30_v60 = vld [vmem:[%s680_s2 + $0x8] sm:$0xff]  ;;  %v259_v62 = vld [vmem:[%s684_s5 + $0x30] sm:$0xff]  ;;  %v188_v63 = vld [vmem:[%s682_s4 + $0x18] sm:$0xff] }
  0x16   :  { %146 = vmatpush.msra.mxu2 %v121_v40  ;;  %214 = vmatpush.msrb.mxu1 %v193_v41  ;;  %v116_v61 = vld [vmem:[%s681_s3 + $0x8] sm:$0xff]  ;;  %v29_v0 = vld [vmem:[%s680_s2] sm:$0xff]  ;;  %v187_v5 = vld [vmem:[%s682_s4 + $0x10] sm:$0xff] }
  0x17   :  { %279 = vmatpush.msra.mxu3 %v264_v42  ;;  %79 = vmatpush.msra.mxu0 %v34_v43  ;;  %v115_v1 = vld [vmem:[%s681_s3] sm:$0xff]  ;;  %v258_v2 = vld [vmem:[%s684_s5 + $0x28] sm:$0xff]  ;;  %v256_v9 = vld [vmem:[%s684_s5 + $0x18] sm:$0xff] }
  0x18   :  { %335 = vmatmul.msk.f32.vlgmr.msra.gmra.mxu1 %vm58_vm1, %v541_v44  ;;  %147 = vmatpush.msra.mxu2 %v120_v45  ;;  %v23_v4 = vld [vmem:[%s683_s0] sm:$0xff]  ;;  %v186_v8 = vld [vmem:[%s682_s4 + $0x8] sm:$0xff]  ;;  %v255_v12 = vld [vmem:[%s684_s5 + $0x10] sm:$0xff] }
  0x19   :  { %280 = vmatpush.msra.mxu3 %v263_v46  ;;  %215 = vmatpush.msrb.mxu1 %v192_v47  ;;  %v257_v6 = vld [vmem:[%s684_s5 + $0x20] sm:$0xff]  ;;  %v271_v14 = vld [vmem:[%s684_s5 + $0x90] sm:$0x3f]  ;;  %v28_v19 = vld [vmem:[%s685_s1 + $0x8] sm:$0xff] }
  0x1a   :  { %80 = vmatpush.msra.mxu0 %v33_v48  ;;  %148 = vmatpush.msra.mxu2 %v119_v49  ;;  %v185_v10 = vld [vmem:[%s682_s4] sm:$0xff]  ;;  %v25_v15 = vld [vmem:[%s683_s0 + $0x10] sm:$0xff] }
  0x1b   :  { %281 = vmatpush.msra.mxu3 %v262_v50  ;;  %216 = vmatpush.msrb.mxu1 %v191_v51  ;;  %v27_v16 = vld [vmem:[%s685_s1] sm:$0xff] }
  0x1c   :  { %81 = vmatpush.msra.mxu0 %v32_v52  ;;  %149 = vmatpush.msra.mxu2 %v118_v53  ;;  %v253_v17 = vld [vmem:[%s684_s5] sm:$0xff] }
  0x1d   :  { %282 = vmatpush.msra.mxu3 %v261_v54  ;;  %217 = vmatpush.msrb.mxu1 %v190_v55  ;;  %v269_v18 = vld [vmem:[%s684_s5 + $0x80] sm:$0xff] }
  0x1e   :  { %341 = vmatmul.msk.f32.vlgmr.msrb.gmra.mxu3 %vm58_vm1, %v541_v44  ;;  %82 = vmatpush.msra.mxu0 %v31_v56 }
  0x1f   :  { %150 = vmatpush.msra.mxu2 %v117_v57  ;;  %283 = vmatpush.msra.mxu3 %v260_v58 }
  0x20   :  { %218 = vmatpush.msrb.mxu1 %v189_v59  ;;  %83 = vmatpush.msra.mxu0 %v30_v60 }
  0x21   :  { %336 = vmatmul.msk.f32.gmra.mxu1 %vm58_vm1, %v477_v24  ;;  %151 = vmatpush.msra.mxu2 %v116_v61 }
  0x22   :  { %284 = vmatpush.msra.mxu3 %v259_v62  ;;  %219 = vmatpush.msrb.mxu1 %v188_v63 }
  0x23   :  { %84 = vmatpush.msra.mxu0 %v29_v0  ;;  %152 = vmatpush.msra.mxu2 %v115_v1 }
  0x24   :  { %285 = vmatpush.msra.mxu3 %v258_v2  ;;  %85 = vmatmul.f32.vlgmr.msra.gmra.mxu0 %v23_v4 }
  0x25   :  { %153 = vmatmul.f32.vlgmr.msra.gmra.mxu2 %v23_v4  ;;  %220 = vmatpush.msrb.mxu1 %v187_v5 }
  0x26   :  { %286 = vmatpush.msra.mxu3 %v257_v6  ;;  %337 = vmatpush.msk.msrb.mxu2 %vm65_vm0, %v403_v3  ;;  %v254_v3 = vld [vmem:[%s684_s5 + $0x8] sm:$0xff] }
  0x27   :  { %221 = vmatpush.msrb.mxu1 %v186_v8  ;;  %342 = vmatmul.msk.f32.gmra.mxu3 %vm58_vm1, %v477_v24 }
  0x28   :  { %287 = vmatpush.msra.mxu3 %v256_v9  ;;  %353 = vset.pattern.permute.xlu0 %v354_v13 }
  0x29   :  { %222 = vmatpush.msrb.mxu1 %v185_v10  ;;  %174 = vmatpush.msrb.mxu2 %v419_v7  ;;  %v270_v7 = vld [vmem:[%s684_s5 + $0x88] sm:$0xff] }
  0x2a   :  { %223 = vmatmul.f32.vlgmr.msrb.gmra.mxu1 %v23_v4  ;;  %288 = vmatpush.msra.mxu3 %v255_v12 }
  0x2b   :  { %343 = vmatpush.msk.msrb.mxu0 %vm65_vm0, %v271_v14  ;;  %349 = vmatpush.msk.msra.mxu1 %vm65_vm0, %v271_v14 }
  0x2c   :  { %289 = vmatpush.msra.mxu3 %v254_v3  ;;  %88 = vmatmul.f32.gmra.mxu0 %v25_v15 }
  0x2d   :  { %156 = vmatmul.f32.gmra.mxu2 %v25_v15  ;;  %50 = vperm.xlu0 %353, %v27_v16  }
  0x2e   :  { %290 = vmatpush.msra.mxu3 %v253_v17  ;;  %175 = vmatpush.msrb.mxu2 %v433_v11 }
  0x2f   :  { %291 = vmatmul.f32.vlgmr.msra.gmra.mxu3 %v23_v4  ;;  %312 = vmatpush.msrb.mxu0 %v270_v7 }
  0x30   :  { %350 = vmatpush.msra.mxu1 %v270_v7 }
  0x31   :  { %313 = vmatpush.msrb.mxu0 %v269_v18 }
  0x32   :  { %226 = vmatmul.f32.gmra.mxu1 %v25_v15 }
  0x33   :  { %351 = vmatpush.msra.mxu1 %v269_v18 }
  0x34   :  { %344 = vmatmul.msk.f32.vlgmr.msrb.gmra.mxu0 %vm58_vm1, %v541_v44 }
  0x35   :  { %338 = vmatmul.msk.f32.vlgmr.msrb.gmra.mxu2 %vm58_vm1, %v541_v44  ;;  %55 = vperm.xlu0 %353, %v28_v19  }
  0x37   :  { %294 = vmatmul.f32.gmra.mxu3 %v25_v15 }
  0x3a   :  { %345 = vmatmul.msk.f32.vlgmr.msra.gmra.mxu1 %vm58_vm1, %v477_v24 }
  0x91   :  { %v180_v20 = vpop.f32.mrf.mxu3 }
  0x95   :  { %v109_v11 = vpop.f32.mrf.mxu1 }
  0x9e   :  { %v112_v21 = vpop.f32.mrf.mxu1 }
  0x9f   :  { %v51_v28 = vpop.permute.xlu0 %50 }
  0xa1   :  { %v247_v22 = vpop.f32.mrf.mxu3  ;;  %v86_v23 = vpop.f32.mrf.mxu0 }
  0xa2   :  { %v87_v34 = vadd.f32 %v86_v23, %v51_v28 }
  0xa4   :  { %v110_v40 = vadd.f32 %v109_v11, %v87_v34 }
  0xa7   :  { %v224_v25 = vpop.f32.mrf.mxu1  ;;  %v56_v37 = vpop.permute.xlu0 %55 }
  0xa8   :  { %v154_v26 = vpop.f32.mrf.mxu2  ;;  %v225_v36 = vadd.f32 %v224_v25, %v51_v28 }
  0xa9   :  { %v89_v29 = vpop.f32.mrf.mxu0  ;;  %v155_v38 = vadd.f32 %v154_v26, %v51_v28 }
  0xaa   :  { %v250_v27 = vpop.f32.mrf.mxu3  ;;  %v248_v42 = vadd.f32 %v247_v22, %v225_v36  ;;  %v90_v43 = vadd.f32 %v89_v29, %v56_v37 }
  0xac   :  { %v113_v52 = vadd.f32 %v112_v21, %v90_v43 }
  0xaf   :  { %v227_v31 = vpop.f32.mrf.mxu1 }
  0xb0   :  { %v157_v30 = vpop.f32.mrf.mxu2  ;;  %v228_v44 = vadd.f32 %v227_v31, %v56_v37 }
  0xb1   :  { %v315_v35 = vpop.f32.mrf.mxu0  ;;  %v158_v24 = vadd.f32 %v157_v30, %v56_v37 }
  0xb2   :  { %v292_v32 = vpop.f32.mrf.mxu3  ;;  %v251_v53 = vadd.f32 %v250_v27, %v228_v44 }
  0xb3   :  { %v293_v33 = vadd.f32 %v292_v32, %v51_v28  ;;  %v181_v48 = vadd.f32 %v180_v20, %v158_v24 }
  0xb5   :  { %v316_v39 = vadd.f32 %v315_v35, %v293_v33  ;;  %v184_v56 = vmax.f32 %v113_v52, %v181_v48 }
  0xb7   :  { %v318_v47 = vpop.f32.mrf.mxu1  ;;  %v321_v49 = vmax.f32 %v248_v42, %v316_v39 }
  0xb8   :  { %v177_v41 = vpop.f32.mrf.mxu2 }
  0xb9   :  { %v178_v45 = vadd.f32 %v177_v41, %v155_v38 }
  0xba   :  { %v295_v46 = vpop.f32.mrf.mxu3 }
  0xbb   :  { %v183_v50 = vmax.f32 %v110_v40, %v178_v45  ;;  %v296_v51 = vadd.f32 %v295_v46, %v56_v37 }
  0xbd   :  { %v323_v54 = vmax.f32 %v183_v50, %v321_v49  ;;  %v319_v55 = vadd.f32 %v318_v47, %v296_v51 }
  0xbf   :  { %v325_v57 = vmax.f32 %v323_v54, 0.0  ;;  %v322_v58 = vmax.f32 %v251_v53, %v319_v55 }
  0xc1   :  { %328 = vst.msk [vmem:[%s686_s6] sm:$0xff] %vm327_vm2, %v325_v57  ;;  %v324_v59 = vmax.f32 %v184_v56, %v322_v58 }
  0xc3   :  { %v326_v60 = vmax.f32 %v324_v59, 0.0 }
  0xc5   :  { %329 = vst.msk [vmem:[%s686_s6 + $0x8] sm:$0xff] %vm327_vm2, %v326_v60 }

// kernel: lenet_forward.5
= control target key start
LH: loop header
LB: loop body
LE: loop exit
PB: predicated region body
PF: predicated region fallthrough
CT: control target
= control target key end

     0   :  { %s616_s0 = inlined_call_operand.vmem [shape: f32[2,400], index: 0, kind: input, shape index: {}]   ;;  %s617_s1 = inlined_call_operand.vmem [shape: f32[400,120], index: 1, kind: input, shape index: {}]   ;;  %s618_s2 = inlined_call_operand.vmem [shape: f32[1,120], index: 2, kind: input, shape index: {}]   ;;  %s619_s3 = inlined_call_operand.vmem [shape: f32[120,84], index: 3, kind: input, shape index: {}]   ;;  %s620_s4 = inlined_call_operand.vmem [shape: f32[1,84], index: 4, kind: input, shape index: {}]   ;;  %s621_s5 = inlined_call_operand.vmem [shape: f32[84,10], index: 5, kind: input, shape index: {}]   ;;  %s622_s6 = inlined_call_operand.vmem [shape: f32[1,10], index: 6, kind: input, shape index: {}]   ;;  %s623_s7 = inlined_call_operand.hbm [shape: f32[2,10], index: 7, kind: output, shape index: {}]  }
   0x1   :  { %v75_v0 = vld [vmem:[%s617_s1 + $0x178] sm:$0xff]  ;;  %v74_v2 = vld [vmem:[%s617_s1 + $0x170] sm:$0xff]  ;;  %v73_v5 = vld [vmem:[%s617_s1 + $0x168] sm:$0xff] }
   0x2   :  { %v43_v1 = vld [vmem:[%s617_s1 + $0x78] sm:$0xff]  ;;  %134 = vmatpush.msra.mxu2 %v75_v0  ;;  %v42_v3 = vld [vmem:[%s617_s1 + $0x70] sm:$0xff]  ;;  %v41_v6 = vld [vmem:[%s617_s1 + $0x68] sm:$0xff] }
   0x3   :  { %94 = vmatpush.msra.mxu0 %v43_v1  ;;  %v59_v4 = vld [vmem:[%s617_s1 + $0xf8] sm:$0xff]  ;;  %v58_v7 = vld [vmem:[%s617_s1 + $0xf0] sm:$0xff]  ;;  %v57_v8 = vld [vmem:[%s617_s1 + $0xe8] sm:$0xff] }
   0x4   :  { %114 = vmatpush.msra.mxu1 %v59_v4  ;;  %135 = vmatpush.msra.mxu2 %v74_v2  ;;  %v72_v9 = vld [vmem:[%s617_s1 + $0x160] sm:$0xff]  ;;  %v71_v12 = vld [vmem:[%s617_s1 + $0x158] sm:$0xff]  ;;  %v70_v15 = vld [vmem:[%s617_s1 + $0x150] sm:$0xff] }
   0x5   :  { %95 = vmatpush.msra.mxu0 %v42_v3  ;;  %v40_v10 = vld [vmem:[%s617_s1 + $0x60] sm:$0xff]  ;;  %v39_v13 = vld [vmem:[%s617_s1 + $0x58] sm:$0xff]  ;;  %v38_v16 = vld [vmem:[%s617_s1 + $0x50] sm:$0xff] }
   0x6   :  { %115 = vmatpush.msra.mxu1 %v58_v7  ;;  %136 = vmatpush.msra.mxu2 %v73_v5  ;;  %v56_v11 = vld [vmem:[%s617_s1 + $0xe0] sm:$0xff]  ;;  %v55_v14 = vld [vmem:[%s617_s1 + $0xd8] sm:$0xff]  ;;  %v54_v17 = vld [vmem:[%s617_s1 + $0xd0] sm:$0xff] }
   0x7   :  { %96 = vmatpush.msra.mxu0 %v41_v6  ;;  %v69_v18 = vld [vmem:[%s617_s1 + $0x148] sm:$0xff]  ;;  %v68_v21 = vld [vmem:[%s617_s1 + $0x140] sm:$0xff]  ;;  %v67_v24 = vld [vmem:[%s617_s1 + $0x138] sm:$0xff] }
   0x8   :  { %116 = vmatpush.msra.mxu1 %v57_v8  ;;  %137 = vmatpush.msra.mxu2 %v72_v9  ;;  %v37_v19 = vld [vmem:[%s617_s1 + $0x48] sm:$0xff]  ;;  %v36_v22 = vld [vmem:[%s617_s1 + $0x40] sm:$0xff]  ;;  %v35_v25 = vld [vmem:[%s617_s1 + $0x38] sm:$0xff] }
   0x9   :  { %97 = vmatpush.msra.mxu0 %v40_v10  ;;  %v53_v20 = vld [vmem:[%s617_s1 + $0xc8] sm:$0xff]  ;;  %v52_v23 = vld [vmem:[%s617_s1 + $0xc0] sm:$0xff]  ;;  %v51_v26 = vld [vmem:[%s617_s1 + $0xb8] sm:$0xff] }
   0xa   :  { %117 = vmatpush.msra.mxu1 %v56_v11  ;;  %138 = vmatpush.msra.mxu2 %v71_v12  ;;  %v77_v27 = vld [vmem:[%s617_s1 + $0x188] sm:$0xff]  ;;  %v27_v28 = vld [vmem:[%s616_s0] sm:$0xff]  ;;  %v66_v29 = vld [vmem:[%s617_s1 + $0x130] sm:$0xff] }
   0xb   :  { %98 = vmatpush.msra.mxu0 %v39_v13  ;;  %v34_v30 = vld [vmem:[%s617_s1 + $0x30] sm:$0xff]  ;;  %168 = vmatpush.msra.mxu3 %v77_v27  ;;  %83 = vst [vmem:[#allocation1] ss:$4 sm:$0xff] %v27_v28  ;;  %v76_v31 = vld [vmem:[%s617_s1 + $0x180] sm:$0xff]  ;;  %v65_v34 = vld [vmem:[%s617_s1 + $0x128] sm:$0xff] }
   0xc   :  { %118 = vmatpush.msra.mxu1 %v55_v14  ;;  %139 = vmatpush.msra.mxu2 %v70_v15  ;;  %v50_v32 = vld [vmem:[%s617_s1 + $0xb0] sm:$0xff]  ;;  %v33_v35 = vld [vmem:[%s617_s1 + $0x28] sm:$0xff]  ;;  %v64_v36 = vld [vmem:[%s617_s1 + $0x120] sm:$0xff] }
   0xd   :  { %99 = vmatpush.msra.mxu0 %v38_v16  ;;  %v189_v33 = vld [vmem:[%s619_s3 + $0x70] sm:$0xff]  ;;  %169 = vmatpush.msra.mxu3 %v76_v31  ;;  %v32_v37 = vld [vmem:[%s617_s1 + $0x20] sm:$0xff]  ;;  %v49_v38 = vld [vmem:[%s617_s1 + $0xa8] sm:$0xff] }
   0xe   :  { %119 = vmatpush.msra.mxu1 %v54_v17  ;;  %140 = vmatpush.msra.mxu2 %v69_v18  ;;  %v188_v39 = vld [vmem:[%s619_s3 + $0x68] sm:$0xff]  ;;  %v48_v40 = vld [vmem:[%s617_s1 + $0xa0] sm:$0xff] }
   0xf   :  { %100 = vmatpush.msra.mxu0 %v37_v19  ;;  %199 = vmatpush.msrb.mxu3 %v189_v33  ;;  %v187_v41 = vld [vmem:[%s619_s3 + $0x60] sm:$0xff] }
  0x10   :  { %120 = vmatpush.msra.mxu1 %v53_v20  ;;  %141 = vmatpush.msra.mxu2 %v68_v21 }
  0x11   :  { %101 = vmatpush.msra.mxu0 %v36_v22 }
  0x12   :  { %121 = vmatpush.msra.mxu1 %v52_v23  ;;  %142 = vmatpush.msra.mxu2 %v67_v24 }
  0x13   :  { %102 = vmatpush.msra.mxu0 %v35_v25 }
  0x14   :  { %122 = vmatpush.msra.mxu1 %v51_v26  ;;  %143 = vmatpush.msra.mxu2 %v66_v29 }
  0x15   :  { %103 = vmatpush.msra.mxu0 %v34_v30 }
  0x16   :  { %123 = vmatpush.msra.mxu1 %v50_v32  ;;  %144 = vmatpush.msra.mxu2 %v65_v34 }
  0x17   :  { %104 = vmatpush.msra.mxu0 %v33_v35 }
  0x18   :  { %12 = vsyncpa [#allocation3], 0  ;;  %124 = vmatpush.msra.mxu1 %v49_v38  ;;  %v63_v42 = vld [vmem:[%s617_s1 + $0x118] sm:$0xff]  ;;  %200 = vmatpush.msrb.mxu3 %v188_v39  ;;  %vm91_vm0 = vcmask 130048   ;;  %v62_v45 = vld [vmem:[%s617_s1 + $0x110] sm:$0xff]  ;;  %vm237_vm1 = vcmask 1043456  }
  0x19   :  { %v31_v43 = vld [vmem:[%s617_s1 + $0x18] sm:$0xff]  ;;  %145 = vmatpush.msra.mxu2 %v64_v36  ;;  %105 = vmatpush.msra.mxu0 %v32_v37  ;;  %v30_v46 = vld [vmem:[%s617_s1 + $0x10] sm:$0xff]  ;;  %v61_v50 = vld [vmem:[%s617_s1 + $0x108] sm:$0xff]  ;;  %vm194_vm2 = vcmask 982016   ;;  %vm233_vm3 = vcmask 687104   ;;  %vm261_vm4 = vcmask 74752  }
  0x1a   :  { %v47_v44 = vld [vmem:[%s617_s1 + $0x98] sm:$0xff]  ;;  %125 = vmatpush.msra.mxu1 %v48_v40  ;;  %201 = vmatpush.msrb.mxu3 %v187_v41  ;;  %v46_v48 = vld [vmem:[%s617_s1 + $0x90] sm:$0xff]  ;;  %v29_v51 = vld [vmem:[%s617_s1 + $0x8] sm:$0xff]  ;;  %s282_s16 = sshll.u32 %s623_s7, 4  ;;  %s283_s16 = int_to_ptr.hbm [resolvable:$true] %s282_s16 }
  0x1b   :  { %v87_v47 = vld.sshfl [vmem:[#allocation1 + $0x18] sm:$0xff pattern:$0x73625140]  ;;  %146 = vmatpush.msra.mxu2 %v63_v42  ;;  %106 = vmatpush.msra.mxu0 %v31_v43  ;;  %v45_v52 = vld [vmem:[%s617_s1 + $0x88] sm:$0xff]  ;;  %v185_v53 = vld [vmem:[%s619_s3 + $0x50] sm:$0xff] }
  0x1c   :  { %v186_v49 = vld [vmem:[%s619_s3 + $0x58] sm:$0xff]  ;;  %126 = vmatpush.msra.mxu1 %v47_v44  ;;  %291 = vmatmul.msk.f32.vlgmr.msra.gmra.mxu3 %vm91_vm0, %v87_v47  ;;  %v60_v54 = vld [vmem:[%s617_s1 + $0x100] sm:$0xff]  ;;  %v86_v56 = vld.sshfl [vmem:[#allocation1 + $0x10] sm:$0xff pattern:$0x73625140] }
  0x1d   :  { %147 = vmatpush.msra.mxu2 %v62_v45  ;;  %107 = vmatpush.msra.mxu0 %v30_v46  ;;  %v28_v55 = vld [vmem:[%s617_s1] sm:$0xff]  ;;  %v184_v59 = vld [vmem:[%s619_s3 + $0x48] sm:$0xff]  ;;  %v182_v62 = vld [vmem:[%s619_s3 + $0x38] sm:$0xff] }
  0x1e   :  { %127 = vmatpush.msra.mxu1 %v46_v48  ;;  %202 = vmatpush.msrb.mxu3 %v186_v49  ;;  %v84_v57 = vld.sshfl [vmem:[#allocation1] sm:$0xff pattern:$0x73625140]  ;;  %v85_v60 = vld.sshfl [vmem:[#allocation1 + $0x8] sm:$0xff pattern:$0x73625140] }
  0x1f   :  { %148 = vmatpush.msra.mxu2 %v61_v50  ;;  %108 = vmatpush.msra.mxu0 %v29_v51  ;;  %v44_v58 = vld [vmem:[%s617_s1 + $0x80] sm:$0xff]  ;;  %v181_v63 = vld [vmem:[%s619_s3 + $0x30] sm:$0xff]  ;;  %v180_v0 = vld [vmem:[%s619_s3 + $0x28] sm:$0xff] }
  0x20   :  { %128 = vmatpush.msra.mxu1 %v45_v52  ;;  %203 = vmatpush.msrb.mxu3 %v185_v53  ;;  %v183_v61 = vld [vmem:[%s619_s3 + $0x40] sm:$0xff]  ;;  %v178_v2 = vld [vmem:[%s619_s3 + $0x18] sm:$0xff]  ;;  %v177_v3 = vld [vmem:[%s619_s3 + $0x10] sm:$0xff] }
  0x21   :  { %149 = vmatpush.msra.mxu2 %v60_v54  ;;  %109 = vmatpush.msra.mxu0 %v28_v55  ;;  %v179_v1 = vld [vmem:[%s619_s3 + $0x20] sm:$0xff]  ;;  %v176_v4 = vld [vmem:[%s619_s3 + $0x8] sm:$0xff]  ;;  %v228_v6 = vld [vmem:[%s621_s5 + $0x50] sm:$0xf] }
  0x22   :  { %150 = vmatmul.f32.vlgmr.msra.gmra.mxu2 %v86_v56  ;;  %110 = vmatmul.f32.vlgmr.msra.gmra.mxu0 %v84_v57  ;;  %v175_v5 = vld [vmem:[%s619_s3] sm:$0xff]  ;;  %v227_v7 = vld [vmem:[%s621_s5 + $0x48] sm:$0xff]  ;;  %v225_v9 = vld [vmem:[%s621_s5 + $0x38] sm:$0xff] }
  0x23   :  { %129 = vmatpush.msra.mxu1 %v44_v58  ;;  %204 = vmatpush.msrb.mxu3 %v184_v59  ;;  %v226_v8 = vld [vmem:[%s621_s5 + $0x40] sm:$0xff]  ;;  %v224_v10 = vld [vmem:[%s621_s5 + $0x30] sm:$0xff]  ;;  %v223_v11 = vld [vmem:[%s621_s5 + $0x28] sm:$0xff] }
  0x24   :  { %130 = vmatmul.f32.vlgmr.msra.gmra.mxu1 %v85_v60  ;;  %293 = vmatpush.msk.msrb.mxu0 %vm237_vm1, %v228_v6  ;;  %v222_v12 = vld [vmem:[%s621_s5 + $0x20] sm:$0xff]  ;;  %v221_v13 = vld [vmem:[%s621_s5 + $0x18] sm:$0xff]  ;;  %v220_v14 = vld [vmem:[%s621_s5 + $0x10] sm:$0xff] }
  0x25   :  { %205 = vmatpush.msrb.mxu3 %v183_v61  ;;  %v296_v15 = vld [vmem:[%s618_s2] ss:$0 sm:$0xff]  ;;  %v219_v25 = vld [vmem:[%s621_s5 + $0x8] sm:$0xff] }
  0x26   :  { %247 = vmatpush.msrb.mxu0 %v227_v7  ;;  %v218_v26 = vld [vmem:[%s621_s5] sm:$0xff] }
  0x27   :  { %206 = vmatpush.msrb.mxu3 %v182_v62  ;;  %v297_v27 = vld [vmem:[%s620_s4] ss:$0 sm:$0xff]  ;;  %s329_s4 = smov [#allocation2]  }
  0x28   :  { %248 = vmatpush.msrb.mxu0 %v226_v8  ;;  %v298_v30 = vld [vmem:[%s622_s6] ss:$0 sm:$0xff]  ;;  %s280_s5 = sshll.u32 %s329_s4, 4  ;;  %s281_s5 = int_to_ptr.vmem [resolvable:$true] %s280_s5 }
  0x29   :  { %207 = vmatpush.msrb.mxu3 %v181_v63 }
  0x2a   :  { %249 = vmatpush.msrb.mxu0 %v225_v9 }
  0x2b   :  { %208 = vmatpush.msrb.mxu3 %v180_v0 }
  0x2c   :  { %250 = vmatpush.msrb.mxu0 %v224_v10 }
  0x2d   :  { %209 = vmatpush.msrb.mxu3 %v179_v1 }
  0x2e   :  { %251 = vmatpush.msrb.mxu0 %v223_v11 }
  0x2f   :  { %210 = vmatpush.msrb.mxu3 %v178_v2 }
  0x30   :  { %252 = vmatpush.msrb.mxu0 %v222_v12 }
  0x31   :  { %211 = vmatpush.msrb.mxu3 %v177_v3 }
  0x32   :  { %253 = vmatpush.msrb.mxu0 %v221_v13 }
  0x33   :  { %212 = vmatpush.msrb.mxu3 %v176_v4 }
  0x34   :  { %254 = vmatpush.msrb.mxu0 %v220_v14 }
  0x35   :  { %213 = vmatpush.msrb.mxu3 %v175_v5 }
  0x36   :  { %255 = vmatpush.msrb.mxu0 %v219_v25 }
  0x38   :  { %256 = vmatpush.msrb.mxu0 %v218_v26 }
  0x9f   :  { %v111_v16 = vpop.f32.mrf.mxu0  ;;  %v171_v21 = vpop.f32.mrf.mxu3 }
  0xa0   :  { %v112_v17 = vadd.f32 %v296_v15, %v111_v16 }
  0xa1   :  { %v131_v18 = vpop.f32.mrf.mxu1 }
  0xa2   :  { %v132_v19 = vadd.f32 %v131_v18, %v112_v17 }
  0xa5   :  { %v151_v20 = vpop.f32.mrf.mxu2 }
  0xa6   :  { %v152_v22 = vadd.f32 %v151_v20, %v132_v19 }
  0xa8   :  { %v172_v23 = vadd.f32 %v171_v21, %v152_v22 }
  0xaa   :  { %v174_v24 = vmax.f32 %v172_v23, 0.0 }
  0xac   :  { %292 = vmatmul.msk.f32.vlgmr.msrb.gmra.mxu3 %vm194_vm2, %v174_v24 }
 0x12f   :  { %v215_v28 = vpop.f32.mrf.mxu3 }
 0x130   :  { %v216_v29 = vadd.f32 %v297_v27, %v215_v28 }
 0x132   :  { %294 = vmatmul.msk.f32.vlgmr.msrb.gmra.mxu0 %vm233_vm3, %v216_v29 }
 0x1af   :  { %v258_v31 = vpop.f32.mrf.mxu0 }
 0x1b0   :  { %v259_v32 = vadd.f32 %v298_v30, %v258_v31 }
 0x1b2   :  { %v262_v33 = vsel %vm261_vm4, %v259_v32, -inf }
 0x1b3   :  { %263 = vmax.xlane.f32.xlu0 %v262_v33 }
 0x226   :  { %v264_v34 = vpop.xlane.xlu0 %263 }
 0x227   :  { %v265_v35 = vsub.f32 %v259_v32, %v264_v34 }
 0x229   :  { %v266_v36 = vmul.f32 1.442695, %v265_v35 }
 0x22b   :  { %299 = vpow2.f32 %v266_v36 }
 0x231   :  { %v300_v37 = vpop.eup %299 }
 0x232   :  { %v268_v38 = vsel %vm261_vm4, %v300_v37, 0.0 }
 0x233   :  { %269 = vadd.xlane.f32.xlu0 %v268_v38 }
 0x2a6   :  { %v270_v39 = vpop.xlane.xlu0 %269 }
 0x2a7   :  { %301 = vlog2.f32 %v270_v39 }
 0x2ad   :  { %v302_v40 = vpop.eup %301 }
 0x2ae   :  { %v272_v41 = vmul.f32 0.6931472, %v302_v40 }
 0x2b0   :  { %v273_v42 = vsub.f32 %v265_v35, %v272_v41 }
 0x2b2   :  { %274 = vst.msk [vmem:[#allocation2] sm:$0x3] %vm261_vm4, %v273_v42 }
 0x2b3   :  { %285 = dma.vmem_to_hbm [thread:$0]  %s281_s5, 32, %s283_s16, [#allocation3]  }
 0x2b4   :  { %327 = dma.done.wait [#allocation3], 32  }
 0x2b5   :  { %328 = vsyncadd [#allocation3], 4294967264 }
 0x2b6   :  { %290 = vsyncpa [#allocation3], 1 }

</bundles_post_ra>
